<compile_context>
chip_gen: v7x
topology: tpu7x:2x2x1
jax: 0.10.0
libtpu: 0.0.40
codegen_flags: <defaults>
</compile_context>

<pallas_src>
import functools

import jax
import jax.numpy as jnp
from jax.experimental import pallas as pl
from jax.experimental.pallas import tpu as pltpu


# ----------------------------------------------------------------------------
# Kernel body
# ----------------------------------------------------------------------------
def _rmsnorm_kernel(x_ref, w_ref, o_ref, *, eps, sub_rows):
    """x_ref: (row_tile, hidden) input-dtype, w_ref: (1, hidden), o_ref: out."""
    input_dtype = x_ref.dtype
    w = w_ref[...]                       # (1, hidden), invariant across steps
    row_tile = x_ref.shape[0]

    def process(start, size):
        # Only `size` (<= sub_rows) rows of f32 intermediates are live at once.
        x = x_ref[pl.ds(start, size), :].astype(jnp.float32)
        variance = jnp.mean(x * x, axis=-1, keepdims=True)
        normed = x * jax.lax.rsqrt(variance + eps)
        # weight * hidden_states.to(input_dtype): intentional round-trip cast,
        # matching the PyTorch reference bit-for-bit in the typical bf16 case.
        o_ref[pl.ds(start, size), :] = (
            w * normed.astype(input_dtype)).astype(o_ref.dtype)

    if row_tile <= sub_rows:
        process(0, row_tile)
    else:
        n_full = row_tile // sub_rows
        tail = row_tile - n_full * sub_rows

        def body(c, carry):
            process(pl.multiple_of(c * sub_rows, sub_rows), sub_rows)
            return carry

        jax.lax.fori_loop(0, n_full, body, 0)
        if tail:
            process(n_full * sub_rows, tail)


# ----------------------------------------------------------------------------
# Tile-size selection
# ----------------------------------------------------------------------------
def _ceil_div(a, b):
    return -(-a // b)


def _round_up(x, m):
    return _ceil_div(x, m) * m


def _tpu_vmem_and_cores():
    """(physical VMEM bytes per TensorCore, TensorCores per chip)."""
    try:
        info = pltpu.get_tpu_info()
        vmem = int(getattr(info, "vmem_capacity_bytes", 0)) or (64 << 20)
    except Exception:
        vmem = 64 << 20          # conservative fallback (v7x-sized)
    try:
        kind = jax.devices()[0].device_kind.lower()
    except Exception:
        kind = ""
    num_cores = 2 if ("v7" in kind or "7x" in kind) else 1
    return vmem, num_cores


def _choose_row_tile(rows, hidden, in_bytes, out_bytes, w_bytes, *,
                     sub_rows, vmem_capacity_bytes, num_cores):
    """Pick the per-grid-step row tile from the real VMEM budget.

    Per grid step the working set is:
      * double-buffered input  tile : row_tile * hidden * in_bytes  * 2
      * double-buffered output tile : row_tile * hidden * out_bytes * 2
      * double-buffered weight tile : hidden * w_bytes * 2   (tiny)
      * in-kernel f32 sub-chunk scratch (x32 + elementwise temps):
          ~ sub_rows * hidden * 4 * 2   (bounded by the sub-chunk loop, NOT
          proportional to row_tile)
    Budget ~60% of physical VMEM so the compiler keeps headroom for vregs,
    semaphores and internal scratch on every generation (v7x only has 64 MiB).
    """
    budget = int(vmem_capacity_bytes * 0.6)
    budget -= sub_rows * hidden * 4 * 2 + hidden * w_bytes * 2
    bytes_per_row = hidden * (in_bytes + out_bytes) * 2
    budget_rows = max(8, budget // max(bytes_per_row, 1))
    tile = max(1, min(budget_rows, rows))

    # Megacore (v7x): keep >=2 grid steps and an even step count when the grid
    # is small so both TensorCores get balanced shards of the parallel row
    # axis.  Single-TC chips (v5e/v6e) keep a whole-fit case as one step: the
    # grid is a serial loop there and splitting only adds pipeline overhead.
    if num_cores >= 2 and rows >= 2 * num_cores * 8:
        steps = _ceil_div(rows, tile)
        if steps < num_cores:
            steps = num_cores
        if steps % num_cores != 0 and steps <= 8 * num_cores:
            steps = _round_up(steps, num_cores)
        tile = _ceil_div(rows, steps)

    # BlockSpec constraint: a partial (non-full-extent) row tile must be a
    # multiple of 8 sublanes.
    if tile < rows:
        tile = _round_up(tile, 8)
        if tile >= rows:
            tile = rows
    return tile


# ----------------------------------------------------------------------------
# Public wrapper
# ----------------------------------------------------------------------------
def rmsnorm(hidden_states, weight, eps=1e-6, *, row_tile=None, sub_rows=128,
            out_dtype=None, vmem_limit_bytes=None):
    """Pallas RMSNorm matching MiniMaxText01RMSNorm.forward semantics.

    out_dtype=None reproduces torch exactly: promote(weight.dtype, x.dtype).
    Pass out_dtype=hidden_states.dtype (or a bf16 weight) for the
    bandwidth-optimal bf16-output path.
    """
    orig_shape = hidden_states.shape
    hidden = orig_shape[-1]
    rows = 1
    for d in orig_shape[:-1]:
        rows *= d

    x2d = hidden_states.reshape(rows, hidden)
    w2d = weight.reshape(1, hidden)

    if out_dtype is None:
        # Exact PyTorch semantics: weight * x.to(input_dtype) in promoted dtype.
        out_dtype = jnp.promote_types(weight.dtype, hidden_states.dtype)

    vmem_capacity, num_cores = _tpu_vmem_and_cores()
    if vmem_limit_bytes is None:
        # Generation-aware scoped-VMEM limit: 48 MiB on v7x (64 MiB physical),
        # 96 MiB on v5e/v6e (128 MiB physical).
        vmem_limit_bytes = min(int(vmem_capacity * 0.75),
                               vmem_capacity - (8 << 20))

    if row_tile is None:
        row_tile = _choose_row_tile(
            rows, hidden,
            jnp.dtype(hidden_states.dtype).itemsize,
            jnp.dtype(out_dtype).itemsize,
            jnp.dtype(weight.dtype).itemsize,
            sub_rows=sub_rows,
            vmem_capacity_bytes=vmem_capacity,
            num_cores=num_cores,
        )
    row_tile = max(1, min(row_tile, rows))

    grid = (pl.cdiv(rows, row_tile),)   # ragged tail block is masked by Pallas

    out2d = pl.pallas_call(
        functools.partial(_rmsnorm_kernel, eps=eps, sub_rows=sub_rows),
        out_shape=jax.ShapeDtypeStruct((rows, hidden), out_dtype),
        grid_spec=pltpu.PrefetchScalarGridSpec(
            num_scalar_prefetch=0,
            grid=grid,
            in_specs=[
                pl.BlockSpec((row_tile, hidden), lambda i: (i, 0)),
                # Invariant weight: constant block index -> no per-step re-DMA.
                pl.BlockSpec((1, hidden), lambda i: (0, 0)),
            ],
            out_specs=pl.BlockSpec((row_tile, hidden), lambda i: (i, 0)),
        ),
        compiler_params=pltpu.CompilerParams(
            dimension_semantics=("parallel",),
            vmem_limit_bytes=int(vmem_limit_bytes),
        ),
    )(x2d, w2d)

    return out2d.reshape(orig_shape)


def rmsnorm_reference(hidden_states, weight, eps=1e-6):
    input_dtype = hidden_states.dtype
    x = hidden_states.astype(jnp.float32)
    variance = jnp.mean(x * x, axis=-1, keepdims=True)
    x = x * jax.lax.rsqrt(variance + eps)
    return weight * x.astype(input_dtype)


if __name__ == "__main__":
    key = jax.random.PRNGKey(0)

    # 1) Small demo shape consistent with the module; weight = ones (as in
    #    nn.Parameter(torch.ones(hidden_size))), f32 weight * bf16 x -> f32 out.
    batch, seq, hidden = 2, 8, 32
    weight = jnp.ones((hidden,), dtype=jnp.float32)
    x = jax.random.normal(key, (batch, seq, hidden),
                          dtype=jnp.float32).astype(jnp.bfloat16)
    out = jax.block_until_ready(rmsnorm(x, weight, eps=1e-6))
    ref = rmsnorm_reference(x, weight, eps=1e-6)
    assert out.shape == ref.shape, (out.shape, ref.shape)
    assert out.dtype == ref.dtype, (out.dtype, ref.dtype)
    assert jnp.allclose(out.astype(jnp.float32), ref.astype(jnp.float32),
                        atol=1e-2, rtol=1e-2), "mismatch vs reference"

    # 2) Ragged row count (rows=21 not a multiple of the explicit 16-row tile):
    #    exercises the cdiv grid + masked tail block, bf16 checkpoint weight
    #    (bandwidth-optimal bf16 output), lane-dense hidden=128.
    b2, s2, h2 = 3, 7, 128
    w2 = (jax.random.normal(jax.random.PRNGKey(1), (h2,), dtype=jnp.float32)
          * 0.1 + 1.0).astype(jnp.bfloat16)
    x2 = jax.random.normal(jax.random.PRNGKey(2), (b2, s2, h2),
                           dtype=jnp.float32).astype(jnp.bfloat16)
    out2 = jax.block_until_ready(rmsnorm(x2, w2, eps=1e-6, row_tile=16))
    ref2 = rmsnorm_reference(x2, w2, eps=1e-6)
    assert out2.shape == ref2.shape and out2.dtype == ref2.dtype
    assert jnp.allclose(out2.astype(jnp.float32), ref2.astype(jnp.float32),
                        atol=2e-2, rtol=2e-2), "mismatch vs reference (ragged)"

    # 3) rows > sub_rows: exercises the in-kernel fori_loop sub-chunking
    #    (full-size chunks + a non-multiple tail inside one tile).
    b3, s3, h3 = 2, 160, 128
    w3 = jnp.ones((h3,), dtype=jnp.bfloat16)
    x3 = jax.random.normal(jax.random.PRNGKey(3), (b3, s3, h3),
                           dtype=jnp.float32).astype(jnp.bfloat16)
    out3 = jax.block_until_ready(rmsnorm(x3, w3, eps=1e-6))
    ref3 = rmsnorm_reference(x3, w3, eps=1e-6)
    assert out3.shape == ref3.shape and out3.dtype == ref3.dtype
    assert jnp.allclose(out3.astype(jnp.float32), ref3.astype(jnp.float32),
                        atol=2e-2, rtol=2e-2), "mismatch vs reference (subchunk)"

    print("KERNEL_OK")
</pallas_src>

<mosaic_0001>
module attributes {stable_mosaic.version = 11 : i64} {
  func.func @_rmsnorm_kernel(%arg0: i32, %arg1: memref<16x32xbf16, #tpu.memory_space<vmem>>, %arg2: memref<1x32xf32, #tpu.memory_space<vmem>>, %arg3: memref<16x32xf32, #tpu.memory_space<vmem>>) attributes {dimension_semantics = [#tpu.dimension_semantics<parallel>], iteration_bounds = array<i64: 1>, scalar_prefetch = 0 : i64, scratch_operands = 0 : i64, tpu.core_type = #tpu.core_type<tc>, window_params = [{transform_indices = @transform_0, window_bounds = array<i64: 16, 32>}, {pipeline_mode = #tpu.pipeline_mode<synchronous>, transform_indices = @transform_1, window_bounds = array<i64: 1, 32>}, {transform_indices = @transform_2, window_bounds = array<i64: 16, 32>}]} {
    %c0 = arith.constant 0 : index
    %c0_0 = arith.constant 0 : index
    %0 = vector.load %arg2[%c0, %c0_0] : memref<1x32xf32, #tpu.memory_space<vmem>>, vector<1x32xf32>
    %c0_1 = arith.constant 0 : index
    %c0_2 = arith.constant 0 : index
    %1 = vector.load %arg1[%c0_1, %c0_2] : memref<16x32xbf16, #tpu.memory_space<vmem>>, vector<16x32xbf16>
    %2 = arith.extf %1 : vector<16x32xbf16> to vector<16x32xf32>
    %3 = arith.mulf %2, %2 : vector<16x32xf32>
    %cst = arith.constant dense<0.000000e+00> : vector<16xf32>
    %4 = vector.multi_reduction <add>, %3, %cst [1] : vector<16x32xf32> to vector<16xf32>
    %5 = vector.shape_cast %4 : vector<16xf32> to vector<16x1xf32>
    %cst_3 = arith.constant 3.200000e+01 : f32
    %6 = vector.broadcast %cst_3 : f32 to vector<16x1xf32>
    %7 = arith.divf %5, %6 : vector<16x1xf32>
    %cst_4 = arith.constant 9.99999997E-7 : f32
    %8 = vector.broadcast %cst_4 : f32 to vector<16x1xf32>
    %9 = arith.addf %7, %8 : vector<16x1xf32>
    %10 = math.rsqrt %9 : vector<16x1xf32>
    %11 = vector.broadcast %10 : vector<16x1xf32> to vector<16x32xf32>
    %12 = arith.mulf %2, %11 : vector<16x32xf32>
    %13 = arith.truncf %12 : vector<16x32xf32> to vector<16x32xbf16>
    %14 = arith.extf %13 : vector<16x32xbf16> to vector<16x32xf32>
    %15 = vector.broadcast %0 : vector<1x32xf32> to vector<16x32xf32>
    %16 = arith.mulf %15, %14 : vector<16x32xf32>
    %c0_5 = arith.constant 0 : index
    %c0_6 = arith.constant 0 : index
    %17 = vector.load %arg3[%c0_5, %c0_6] : memref<16x32xf32, #tpu.memory_space<vmem>>, vector<16x32xf32>
    tpu.vector_store %arg3[%c0_5, %c0_6], %16 {strides = array<i32>} : memref<16x32xf32, #tpu.memory_space<vmem>>, vector<16x32xf32>,
    return
  }
  func.func @transform_0(%arg0: i32) -> (i32, i32) {
    %c0_i32 = arith.constant 0 : i32
    %c0_i32_0 = arith.constant 0 : i32
    return %arg0, %c0_i32 : i32, i32
  }
  func.func @transform_1(%arg0: i32) -> (i32, i32) {
    %c0_i32 = arith.constant 0 : i32
    %c0_i32_0 = arith.constant 0 : i32
    %c0_i32_1 = arith.constant 0 : i32
    return %c0_i32, %c0_i32_0 : i32, i32
  }
  func.func @transform_2(%arg0: i32) -> (i32, i32) {
    %c0_i32 = arith.constant 0 : i32
    %c0_i32_0 = arith.constant 0 : i32
    return %arg0, %c0_i32 : i32, i32
  }
}

</mosaic_0001>

<bundles_post_ra>
// kernel: tpu_custom_call.1
= control target key start
LH: loop header
LB: loop body
LE: loop exit
PB: predicated region body
PF: predicated region fallthrough
CT: control target
= control target key end

     0   :  { %7 = vsyncpa [#allocation3], 0  ;;  %s194_s0 = inlined_call_operand.hbm [shape: bf16[16,32], index: 0, kind: input, shape index: {}]   ;;  %s195_s1 = inlined_call_operand.vmem [shape: f32[1,32], index: 1, kind: input, shape index: {}]   ;;  %s196_s2 = inlined_call_operand.hbm [shape: f32[16,32], index: 2, kind: output, shape index: {}]  }
   0x1   :  { %8 = vsyncpa [#allocation4], 0  ;;  %s142_s9 = smov [#allocation2]   ;;  %s94_s13 = scalar_lea.hbm %s194_s0, 128 }
   0x2   :  { %s14_s10 = sshll.u32 %s142_s9, 4  ;;  %p95_p0 = scmp.ne.s32.totalorder %s194_s0, %s94_s13  ;;  %s15_s10 = int_to_ptr.vmem [resolvable:$true] %s14_s10 }
   0x3   :  { %p98_p1 = scmp.lt.u32.totalorder %s94_s13, %s194_s0 }
   0x5   :  { %p100_p2 = pnand %p98_p1, %p95_p0 }
   0x7   :  { %103 = shalt.err (!%p100_p2)
}
   0x8   :  { %s104_s18 = scalar_lea.vmem %s15_s10, 128  ;;  %p109_p4 = scmp.lt.s32.totalorder %s15_s10, %s15_s10 }
   0x9   :  { %p105_p3 = scmp.ne.s32.totalorder %s15_s10, %s104_s18  ;;  %p110_p5 = scmp.lt.s32.totalorder %s104_s18, %s104_s18 }
   0xb   :  { %p111_p6 = por %p110_p5, %p109_p4 }
   0xd   :  { %p112_p7 = pnand %p111_p6, %p105_p3 }
   0xf   :  { %115 = shalt.err (!%p112_p7)
}
  0x10   :  { %s143_s19 = smov 64   ;;  %s144_s20 = smov 4  }
  0x11   :  { %20 = dma.hbm_to_vmem [thread:$0]  %s194_s0, 128, %s15_s10, [#allocation3], %s143_s19, %s143_s19, %s144_s20  }
  0x12   :  { %138 = dma.done.wait [#allocation3], 128  }
  0x13   :  { %139 = vsyncadd [#allocation3], 4294967168  ;;  %v81_v0 = vld [vmem:[#allocation2] sm:$0xff]   ;;  %vm33_vm0 = vcmask 261120   ;;  %s145_s0 = smov [#allocation5]  }
  0x14   :  { %v82_v1 = vunpack.c.l.bf16 %v81_v0  ;;  %v83_v2 = vunpack.c.h.bf16 %v81_v0  ;;  %s67_s23 = sshll.u32 %s145_s0, 4  ;;  %v79_v18 = vld [vmem:[%s195_s1] ss:$0 sm:$0xff]  ;;  %s68_s23 = int_to_ptr.vmem [resolvable:$true] %s67_s23 }
  0x15   :  { %s116_s26 = scalar_lea.vmem %s68_s23, 256  ;;  %p121_p9 = scmp.lt.s32.totalorder %s68_s23, %s68_s23 }
  0x16   :  { %v31_v3 = vmul.f32 %v82_v1, %v82_v1  ;;  %v32_v4 = vmul.f32 %v83_v2, %v83_v2  ;;  %p117_p8 = scmp.ne.s32.totalorder %s68_s23, %s116_s26  ;;  %p122_p10 = scmp.lt.s32.totalorder %s116_s26, %s116_s26 }
  0x18   :  { %v34_v5 = vsel %vm33_vm0, %v31_v3, 0.0  ;;  %v37_v6 = vsel %vm33_vm0, %v32_v4, 0.0  ;;  %p123_p11 = por %p122_p10, %p121_p9 }
  0x19   :  { %35 = vadd.xlane.f32.xlu0 %v34_v5 }
  0x1a   :  { %p124_p12 = pnand %p123_p11, %p117_p8 }
  0x1d   :  { %38 = vadd.xlane.f32.xlu0 %v37_v6 }
  0xa6   :  { %v36_v7 = vpop.xlane.xlu0 %35 }
  0xa7   :  { %v41_v8 = vmul.f32 0.03125, %v36_v7 }
  0xa9   :  { %v43_v9 = vadd.f32 1e-06, %v41_v8 }
  0xaa   :  { %v39_v10 = vpop.xlane.xlu0 %38 }
  0xab   :  { %v42_v11 = vmul.f32 0.03125, %v39_v10  ;;  %90 = vrsqrt.f32 %v43_v9 }
  0xad   :  { %v44_v12 = vadd.f32 1e-06, %v42_v11 }
  0xaf   :  { %92 = vrsqrt.f32 %v44_v12 }
  0xb5   :  { %v91_v13 = vpop.eup %90 }
  0xb6   :  { %v47_v15 = vmul.f32 %v91_v13, %v82_v1 }
  0xb9   :  { %v93_v14 = vpop.eup %92 }
  0xba   :  { %v48_v16 = vmul.f32 %v93_v14, %v83_v2 }
  0xbc   :  { %v49_v17 = vpack.c.bf16 %v48_v16, %v47_v15 }
  0xbe   :  { %v50_v19 = vunpack.c.l.bf16 %v49_v17  ;;  %v51_v20 = vunpack.c.h.bf16 %v49_v17 }
  0xc0   :  { %v58_v21 = vmul.f32 %v79_v18, %v50_v19  ;;  %v59_v22 = vmul.f32 %v79_v18, %v51_v20 }
  0xc2   :  { %60 = vst.msk [vmem:[#allocation5] sm:$0xff] %vm33_vm0, %v58_v21  ;;  %61 = vst.msk [vmem:[#allocation5 + $0x8] sm:$0xff] %vm33_vm0, %v59_v22 }
  0xc3   :  { %127 = shalt.err (!%p124_p12)
}
  0xc4   :  { %s128_s1 = scalar_lea.hbm %s196_s2, 256 }
  0xc5   :  { %p129_p13 = scmp.ne.s32.totalorder %s196_s2, %s128_s1  ;;  %p132_p0 = scmp.lt.u32.totalorder %s128_s1, %s196_s2 }
  0xc7   :  { %p134_p1 = pnand %p132_p0, %p129_p13 }
  0xc9   :  { %137 = shalt.err (!%p134_p1)
}
  0xca   :  { %s146_s5 = smov 128   ;;  %s147_s6 = smov 8  }
  0xcb   :  { %73 = dma.vmem_to_hbm [thread:$0]  %s68_s23, 256, %s196_s2, [#allocation4], %s146_s5, %s146_s5, %s147_s6  }
  0xcc   :  { %140 = dma.done.wait [#allocation4], 256  }
  0xcd   :  { %141 = vsyncadd [#allocation4], 4294967040 }
  0xce   :  { %77 = vsyncpa [#allocation3], 1 }
  0xcf   :  { %78 = vsyncpa [#allocation4], 1 }

</bundles_post_ra>
